<compile_context>
chip_gen: v5e
topology: v5e:2x2
jax: 0.10.0
libtpu: 0.0.40
codegen_flags: <defaults>
</compile_context>

<pallas_src>
import jax
import jax.numpy as jnp
from jax.experimental import pallas as pl
from jax.experimental.pallas import tpu as pltpu


def _mlp_kernel(x_ref, w1_ref, b1_ref, w2_ref, b2_ref, w3_ref, b3_ref, o_ref):
    # ---- Linear(d, d1) + Sigmoid ----  (bf16 matmul, f32 accumulate)
    h1 = jnp.dot(x_ref[...], w1_ref[...], preferred_element_type=jnp.float32)
    h1 = jax.nn.sigmoid(h1 + b1_ref[...])          # [TB, d1] f32

    # ---- Linear(d1, d2) + Sigmoid ----
    h2 = jnp.dot(h1.astype(jnp.bfloat16), w2_ref[...],
                 preferred_element_type=jnp.float32)
    h2 = jax.nn.sigmoid(h2 + b2_ref[...])          # [TB, d2] f32

    # ---- Linear(d2, KPAD) + Softmax(dim=-1) ----
    # Padded logit columns receive a -1e30 bias -> exp underflows to 0, so the
    # normalization only covers the real k classes.
    logits = jnp.dot(h2.astype(jnp.bfloat16), w3_ref[...],
                     preferred_element_type=jnp.float32)
    logits = logits + b3_ref[...]                  # [TB, KPAD] f32
    m = jnp.max(logits, axis=-1, keepdims=True)
    e = jnp.exp(logits - m)
    denom = jnp.sum(e, axis=-1, keepdims=True)
    o_ref[...] = (e * pl.reciprocal(denom, approx=True)).astype(o_ref.dtype)


def nn2_forward(x_nchw, params, *, tb_max=2048):
    """x_nchw: [B, C, H, W].  Returns softmax probabilities [B, k] (f32)."""
    w1, b1, w2, b2, w3, b3 = params
    B = x_nchw.shape[0]
    d, d1 = w1.shape
    d2, k = w3.shape

    # Lane-dense padded class dimension (multiple of 128).
    kpad = ((k + 127) // 128) * 128

    # nn.Flatten(): [B, C, H, W] -> [B, C*H*W]; bf16 halves HBM traffic for the
    # dominant x stream.
    x = x_nchw.reshape(B, -1).astype(jnp.bfloat16)
    assert x.shape[1] == d

    # bf16 weights for the MXU; biases stay f32 (added post-accumulation).
    w1b = w1.astype(jnp.bfloat16)
    w2b = w2.astype(jnp.bfloat16)
    b1f = b1.astype(jnp.float32)
    b2f = b2.astype(jnp.float32)
    # Pad w3/b3 out to kpad columns: zero weights, -1e30 bias on padded cols.
    w3p = jnp.zeros((d2, kpad), jnp.bfloat16).at[:, :k].set(w3.astype(jnp.bfloat16))
    b3p = jnp.full((1, kpad), -1e30, jnp.float32).at[:, :k].set(
        b3.reshape(1, k).astype(jnp.float32))

    # Batch tile: either the whole batch (small B) or tb_max rows.
    TB = B if B <= tb_max else tb_max
    grid = (pl.cdiv(B, TB),)

    def resident(shape):  # weight/bias: same block every grid step -> stays in VMEM
        return pl.BlockSpec(shape, lambda i: (0,) * len(shape))

    cost = pl.CostEstimate(
        flops=2 * B * (d * d1 + d1 * d2 + d2 * kpad),
        transcendentals=B * (d1 + d2 + kpad),
        bytes_accessed=(x.size * 2 + w1b.size * 2 + w2b.size * 2 + w3p.size * 2
                        + b1f.size * 4 + b2f.size * 4 + b3p.size * 4
                        + B * kpad * 4),
    )

    out_padded = pl.pallas_call(
        _mlp_kernel,
        out_shape=jax.ShapeDtypeStruct((B, kpad), jnp.float32),
        grid=grid,
        in_specs=[
            pl.BlockSpec((TB, d), lambda i: (i, 0)),   # streamed x tile
            resident(w1b.shape),
            resident(b1f.shape),
            resident(w2b.shape),
            resident(b2f.shape),
            resident(w3p.shape),
            resident(b3p.shape),
        ],
        out_specs=pl.BlockSpec((TB, kpad), lambda i: (i, 0)),
        compiler_params=pltpu.CompilerParams(
            dimension_semantics=("parallel",),
        ),
        cost_estimate=cost,
    )(x, w1b, b1f, w2b, b2f, w3p, b3p)

    # Drop the padded (exactly-zero) class columns.
    return out_padded[:, :k]


def init_params(key, d, d1, d2, k):
    """Deterministic init mimicking nn.Linear (uniform +/- 1/sqrt(fan_in)).

    Weights are stored as [in, out] (transpose of torch's [out, in])."""
    keys = jax.random.split(key, 6)

    def lin(kw, kb, fan_in, fan_out):
        bound = 1.0 / jnp.sqrt(fan_in)
        w = jax.random.uniform(kw, (fan_in, fan_out), jnp.float32, -bound, bound)
        b = jax.random.uniform(kb, (1, fan_out), jnp.float32, -bound, bound)
        return w, b

    w1, b1 = lin(keys[0], keys[1], d, d1)
    w2, b2 = lin(keys[2], keys[3], d1, d2)
    w3, b3 = lin(keys[4], keys[5], d2, k)
    return (w1, b1, w2, b2, w3, b3)


def _reference(x_nchw, params):
    """Pure-JAX f32 reference of the PyTorch forward."""
    w1, b1, w2, b2, w3, b3 = params
    x = x_nchw.reshape(x_nchw.shape[0], -1).astype(jnp.float32)
    h1 = jax.nn.sigmoid(x @ w1 + b1)
    h2 = jax.nn.sigmoid(h1 @ w2 + b2)
    return jax.nn.softmax(h2 @ w3 + b3, axis=-1)


if __name__ == "__main__":
    # Small shapes consistent with the module: x is an image-like NCHW batch.
    B, C, H, W = 2, 4, 16, 16
    d = C * H * W          # 1024
    d1, d2, k = 32, 32, 8

    root = jax.random.PRNGKey(0)
    kx, kp = jax.random.split(root)

    x = jax.random.normal(kx, (B, C, H, W), jnp.float32)
    params = init_params(kp, d, d1, d2, k)

    probs = jax.jit(nn2_forward)(x, params)
    probs = jax.block_until_ready(probs)

    # sanity: shape, rows sum to ~1 (approx reciprocal), close to f32 reference
    # (bf16 matmuls -> tolerate ~1e-2-level differences).
    assert probs.shape == (B, k)
    assert jnp.allclose(jnp.sum(probs, axis=-1), 1.0, atol=1e-2)
    ref = _reference(x, params)
    assert jnp.allclose(probs, ref, atol=5e-2)

    print("KERNEL_OK")
</pallas_src>

<mosaic_0001>
module attributes {stable_mosaic.version = 11 : i64} {
  func.func @_mlp_kernel(%arg0: i32, %arg1: memref<2x1024xbf16, #tpu.memory_space<vmem>>, %arg2: memref<1024x32xbf16, #tpu.memory_space<vmem>>, %arg3: memref<1x32xf32, #tpu.memory_space<vmem>>, %arg4: memref<32x32xbf16, #tpu.memory_space<vmem>>, %arg5: memref<1x32xf32, #tpu.memory_space<vmem>>, %arg6: memref<32x128xbf16, #tpu.memory_space<vmem>>, %arg7: memref<1x128xf32, #tpu.memory_space<vmem>>, %arg8: memref<2x128xf32, #tpu.memory_space<vmem>>) attributes {dimension_semantics = [#tpu.dimension_semantics<parallel>], iteration_bounds = array<i64: 1>, scalar_prefetch = 0 : i64, scratch_operands = 0 : i64, tpu.core_type = #tpu.core_type<tc>, window_params = [{transform_indices = @transform_0, window_bounds = array<i64: 2, 1024>}, {pipeline_mode = #tpu.pipeline_mode<synchronous>, transform_indices = @transform_1, window_bounds = array<i64: 1024, 32>}, {pipeline_mode = #tpu.pipeline_mode<synchronous>, transform_indices = @transform_2, window_bounds = array<i64: 1, 32>}, {pipeline_mode = #tpu.pipeline_mode<synchronous>, transform_indices = @transform_3, window_bounds = array<i64: 32, 32>}, {pipeline_mode = #tpu.pipeline_mode<synchronous>, transform_indices = @transform_4, window_bounds = array<i64: 1, 32>}, {pipeline_mode = #tpu.pipeline_mode<synchronous>, transform_indices = @transform_5, window_bounds = array<i64: 32, 128>}, {pipeline_mode = #tpu.pipeline_mode<synchronous>, transform_indices = @transform_6, window_bounds = array<i64: 1, 128>}, {transform_indices = @transform_7, window_bounds = array<i64: 2, 128>}]} {
    %c0 = arith.constant 0 : index
    %c0_0 = arith.constant 0 : index
    %0 = vector.load %arg1[%c0, %c0_0] : memref<2x1024xbf16, #tpu.memory_space<vmem>>, vector<2x1024xbf16>
    %c0_1 = arith.constant 0 : index
    %c0_2 = arith.constant 0 : index
    %1 = vector.load %arg2[%c0_1, %c0_2] : memref<1024x32xbf16, #tpu.memory_space<vmem>>, vector<1024x32xbf16>
    %cst = arith.constant dense<0.000000e+00> : vector<2x32xf32>
    %2 = tpu.matmul %0, %1, %cst {dimension_numbers = #tpu.dot_dimension_numbers<[1], [0], [0], [1], [0, 0, 1, 1], [], []>} : vector<2x1024xbf16>, vector<1024x32xbf16>, vector<2x32xf32> -> vector<2x32xf32>
    %c0_3 = arith.constant 0 : index
    %c0_4 = arith.constant 0 : index
    %3 = vector.load %arg3[%c0_3, %c0_4] : memref<1x32xf32, #tpu.memory_space<vmem>>, vector<1x32xf32>
    %4 = vector.broadcast %3 : vector<1x32xf32> to vector<2x32xf32>
    %5 = arith.addf %2, %4 : vector<2x32xf32>
    %6 = arith.negf %5 : vector<2x32xf32>
    %7 = math.exp %6 : vector<2x32xf32>
    %cst_5 = arith.constant 1.000000e+00 : f32
    %8 = vector.broadcast %cst_5 : f32 to vector<2x32xf32>
    %9 = arith.addf %8, %7 : vector<2x32xf32>
    %10 = arith.divf %8, %9 : vector<2x32xf32>
    %11 = arith.truncf %10 : vector<2x32xf32> to vector<2x32xbf16>
    %c0_6 = arith.constant 0 : index
    %c0_7 = arith.constant 0 : index
    %12 = vector.load %arg4[%c0_6, %c0_7] : memref<32x32xbf16, #tpu.memory_space<vmem>>, vector<32x32xbf16>
    %cst_8 = arith.constant dense<0.000000e+00> : vector<2x32xf32>
    %13 = tpu.matmul %11, %12, %cst_8 {dimension_numbers = #tpu.dot_dimension_numbers<[1], [0], [0], [1], [0, 0, 1, 1], [], []>} : vector<2x32xbf16>, vector<32x32xbf16>, vector<2x32xf32> -> vector<2x32xf32>
    %c0_9 = arith.constant 0 : index
    %c0_10 = arith.constant 0 : index
    %14 = vector.load %arg5[%c0_9, %c0_10] : memref<1x32xf32, #tpu.memory_space<vmem>>, vector<1x32xf32>
    %15 = vector.broadcast %14 : vector<1x32xf32> to vector<2x32xf32>
    %16 = arith.addf %13, %15 : vector<2x32xf32>
    %17 = arith.negf %16 : vector<2x32xf32>
    %18 = math.exp %17 : vector<2x32xf32>
    %cst_11 = arith.constant 1.000000e+00 : f32
    %19 = vector.broadcast %cst_11 : f32 to vector<2x32xf32>
    %20 = arith.addf %19, %18 : vector<2x32xf32>
    %21 = arith.divf %19, %20 : vector<2x32xf32>
    %22 = arith.truncf %21 : vector<2x32xf32> to vector<2x32xbf16>
    %c0_12 = arith.constant 0 : index
    %c0_13 = arith.constant 0 : index
    %23 = vector.load %arg6[%c0_12, %c0_13] : memref<32x128xbf16, #tpu.memory_space<vmem>>, vector<32x128xbf16>
    %cst_14 = arith.constant dense<0.000000e+00> : vector<2x128xf32>
    %24 = tpu.matmul %22, %23, %cst_14 {dimension_numbers = #tpu.dot_dimension_numbers<[1], [0], [0], [1], [0, 0, 1, 1], [], []>} : vector<2x32xbf16>, vector<32x128xbf16>, vector<2x128xf32> -> vector<2x128xf32>
    %c0_15 = arith.constant 0 : index
    %c0_16 = arith.constant 0 : index
    %25 = vector.load %arg7[%c0_15, %c0_16] : memref<1x128xf32, #tpu.memory_space<vmem>>, vector<1x128xf32>
    %26 = vector.broadcast %25 : vector<1x128xf32> to vector<2x128xf32>
    %27 = arith.addf %24, %26 : vector<2x128xf32>
    %cst_17 = arith.constant dense<0xFF800000> : vector<2xf32>
    %28 = vector.multi_reduction <maximumf>, %27, %cst_17 [1] : vector<2x128xf32> to vector<2xf32>
    %29 = vector.shape_cast %28 : vector<2xf32> to vector<2x1xf32>
    %30 = vector.broadcast %29 : vector<2x1xf32> to vector<2x128xf32>
    %31 = arith.subf %27, %30 : vector<2x128xf32>
    %32 = math.exp %31 : vector<2x128xf32>
    %cst_18 = arith.constant dense<0.000000e+00> : vector<2xf32>
    %33 = vector.multi_reduction <add>, %32, %cst_18 [1] : vector<2x128xf32> to vector<2xf32>
    %34 = vector.shape_cast %33 : vector<2xf32> to vector<2x1xf32>
    %35 = tpu.reciprocal %34 {approx = true} : vector<2x1xf32> -> vector<2x1xf32>
    %36 = vector.broadcast %35 : vector<2x1xf32> to vector<2x128xf32>
    %37 = arith.mulf %32, %36 : vector<2x128xf32>
    %c0_19 = arith.constant 0 : index
    %c0_20 = arith.constant 0 : index
    %38 = vector.load %arg8[%c0_19, %c0_20] : memref<2x128xf32, #tpu.memory_space<vmem>>, vector<2x128xf32>
    tpu.vector_store %arg8[%c0_19, %c0_20], %37 {strides = array<i32>} : memref<2x128xf32, #tpu.memory_space<vmem>>, vector<2x128xf32>,
    return
  }
  func.func @transform_0(%arg0: i32) -> (i32, i32) {
    %c0_i32 = arith.constant 0 : i32
    %c0_i32_0 = arith.constant 0 : i32
    return %arg0, %c0_i32 : i32, i32
  }
  func.func @transform_1(%arg0: i32) -> (i32, i32) {
    %c0_i32 = arith.constant 0 : i32
    %c0_i32_0 = arith.constant 0 : i32
    %c0_i32_1 = arith.constant 0 : i32
    return %c0_i32, %c0_i32_0 : i32, i32
  }
  func.func @transform_2(%arg0: i32) -> (i32, i32) {
    %c0_i32 = arith.constant 0 : i32
    %c0_i32_0 = arith.constant 0 : i32
    %c0_i32_1 = arith.constant 0 : i32
    return %c0_i32, %c0_i32_0 : i32, i32
  }
  func.func @transform_3(%arg0: i32) -> (i32, i32) {
    %c0_i32 = arith.constant 0 : i32
    %c0_i32_0 = arith.constant 0 : i32
    %c0_i32_1 = arith.constant 0 : i32
    return %c0_i32, %c0_i32_0 : i32, i32
  }
  func.func @transform_4(%arg0: i32) -> (i32, i32) {
    %c0_i32 = arith.constant 0 : i32
    %c0_i32_0 = arith.constant 0 : i32
    %c0_i32_1 = arith.constant 0 : i32
    return %c0_i32, %c0_i32_0 : i32, i32
  }
  func.func @transform_5(%arg0: i32) -> (i32, i32) {
    %c0_i32 = arith.constant 0 : i32
    %c0_i32_0 = arith.constant 0 : i32
    %c0_i32_1 = arith.constant 0 : i32
    return %c0_i32, %c0_i32_0 : i32, i32
  }
  func.func @transform_6(%arg0: i32) -> (i32, i32) {
    %c0_i32 = arith.constant 0 : i32
    %c0_i32_0 = arith.constant 0 : i32
    %c0_i32_1 = arith.constant 0 : i32
    return %c0_i32, %c0_i32_0 : i32, i32
  }
  func.func @transform_7(%arg0: i32) -> (i32, i32) {
    %c0_i32 = arith.constant 0 : i32
    %c0_i32_0 = arith.constant 0 : i32
    return %arg0, %c0_i32 : i32, i32
  }
}

</mosaic_0001>

<bundles_post_ra>
// kernel: nn2_forward.1
= control target key start
LH: loop header
LB: loop body
LE: loop exit
PB: predicated region body
PF: predicated region fallthrough
CT: control target
= control target key end

     0   :  { %s1457_s0 = inlined_call_operand.vmem [shape: bf16[2,1024], index: 0, kind: input, shape index: {}]   ;;  %s1458_s1 = inlined_call_operand.vmem [shape: bf16[1024,32], index: 1, kind: input, shape index: {}]   ;;  %s1459_s2 = inlined_call_operand.vmem [shape: f32[1,32], index: 2, kind: input, shape index: {}]   ;;  %s1460_s3 = inlined_call_operand.vmem [shape: bf16[32,32], index: 3, kind: input, shape index: {}]   ;;  %s1461_s4 = inlined_call_operand.vmem [shape: f32[1,32], index: 4, kind: input, shape index: {}]   ;;  %s1462_s5 = inlined_call_operand.vmem [shape: bf16[32,128], index: 5, kind: input, shape index: {}]   ;;  %s1463_s6 = inlined_call_operand.vmem [shape: f32[1,128], index: 6, kind: input, shape index: {}]   ;;  %s1464_s7 = inlined_call_operand.hbm [shape: f32[2,128], index: 7, kind: output, shape index: {}]  }
   0x1   :  { %v1092_v0 = vld [vmem:[%s1458_s1 + $0x38] sm:$0xff]  ;;  %v1091_v4 = vld [vmem:[%s1458_s1 + $0x30] sm:$0xff]  ;;  %v1090_v8 = vld [vmem:[%s1458_s1 + $0x28] sm:$0xff] }
   0x2   :  { %v1100_v1 = vld [vmem:[%s1458_s1 + $0x78] sm:$0xff]  ;;  %563 = vmatpush.bf16.msra.mxu0 %v1092_v0  ;;  %v1099_v5 = vld [vmem:[%s1458_s1 + $0x70] sm:$0xff]  ;;  %v1098_v9 = vld [vmem:[%s1458_s1 + $0x68] sm:$0xff] }
   0x3   :  { %v1108_v2 = vld [vmem:[%s1458_s1 + $0xb8] sm:$0xff]  ;;  %576 = vmatpush.bf16.msra.mxu1 %v1100_v1  ;;  %v1107_v6 = vld [vmem:[%s1458_s1 + $0xb0] sm:$0xff]  ;;  %v1106_v10 = vld [vmem:[%s1458_s1 + $0xa8] sm:$0xff] }
   0x4   :  { %v1116_v3 = vld [vmem:[%s1458_s1 + $0xf8] sm:$0xff]  ;;  %589 = vmatpush.bf16.msra.mxu2 %v1108_v2  ;;  %v1115_v7 = vld [vmem:[%s1458_s1 + $0xf0] sm:$0xff]  ;;  %v1114_v11 = vld [vmem:[%s1458_s1 + $0xe8] sm:$0xff] }
   0x5   :  { %602 = vmatpush.bf16.msra.mxu3 %v1116_v3  ;;  %v1089_v12 = vld [vmem:[%s1458_s1 + $0x20] sm:$0xff]  ;;  %v1088_v17 = vld [vmem:[%s1458_s1 + $0x18] sm:$0xff]  ;;  %v1087_v21 = vld [vmem:[%s1458_s1 + $0x10] sm:$0xff] }
   0x6   :  { %564 = vmatpush.bf16.msra.mxu0 %v1091_v4  ;;  %v1097_v13 = vld [vmem:[%s1458_s1 + $0x60] sm:$0xff]  ;;  %v1096_v18 = vld [vmem:[%s1458_s1 + $0x58] sm:$0xff]  ;;  %v1095_v22 = vld [vmem:[%s1458_s1 + $0x50] sm:$0xff] }
   0x7   :  { %577 = vmatpush.bf16.msra.mxu1 %v1099_v5  ;;  %v1105_v14 = vld [vmem:[%s1458_s1 + $0xa0] sm:$0xff]  ;;  %v1104_v19 = vld [vmem:[%s1458_s1 + $0x98] sm:$0xff]  ;;  %v1103_v23 = vld [vmem:[%s1458_s1 + $0x90] sm:$0xff] }
   0x8   :  { %590 = vmatpush.bf16.msra.mxu2 %v1107_v6  ;;  %v1113_v15 = vld [vmem:[%s1458_s1 + $0xe0] sm:$0xff]  ;;  %v1112_v20 = vld [vmem:[%s1458_s1 + $0xd8] sm:$0xff]  ;;  %v1111_v24 = vld [vmem:[%s1458_s1 + $0xd0] sm:$0xff] }
   0x9   :  { %603 = vmatpush.bf16.msra.mxu3 %v1115_v7  ;;  %v28_v16 = vld [vmem:[%s1457_s0] sm:$0xff] }
   0xa   :  { %565 = vmatpush.bf16.msra.mxu0 %v1090_v8  ;;  %162 = vst [vmem:[#allocation1] ss:$9 sm:$0xff] %v28_v16 }
   0xb   :  { %578 = vmatpush.bf16.msra.mxu1 %v1098_v9 }
   0xc   :  { %591 = vmatpush.bf16.msra.mxu2 %v1106_v10 }
   0xd   :  { %604 = vmatpush.bf16.msra.mxu3 %v1114_v11 }
   0xe   :  { %566 = vmatpush.bf16.msra.mxu0 %v1089_v12 }
   0xf   :  { %579 = vmatpush.bf16.msra.mxu1 %v1097_v13 }
  0x10   :  { %592 = vmatpush.bf16.msra.mxu2 %v1105_v14 }
  0x11   :  { %605 = vmatpush.bf16.msra.mxu3 %v1113_v15 }
  0x12   :  { %567 = vmatpush.bf16.msra.mxu0 %v1088_v17 }
  0x13   :  { %580 = vmatpush.bf16.msra.mxu1 %v1096_v18 }
  0x14   :  { %593 = vmatpush.bf16.msra.mxu2 %v1104_v19 }
  0x15   :  { %606 = vmatpush.bf16.msra.mxu3 %v1112_v20 }
  0x16   :  { %12 = vsyncpa [#allocation3], 0  ;;  %568 = vmatpush.bf16.msra.mxu0 %v1087_v21  ;;  %v1086_v25 = vld [vmem:[%s1458_s1 + $0x8] sm:$0xff]  ;;  %v1085_v29 = vld [vmem:[%s1458_s1] sm:$0xff]  ;;  %vm707_vm4 = vcmask 261120   ;;  %vm780_vm9 = vcmask 1041408  }
  0x17   :  { %581 = vmatpush.bf16.msra.mxu1 %v1095_v22  ;;  %v1094_v26 = vld [vmem:[%s1458_s1 + $0x48] sm:$0xff]  ;;  %v1093_v30 = vld [vmem:[%s1458_s1 + $0x40] sm:$0xff]  ;;  %v1124_v33 = vld [vmem:[%s1458_s1 + $0x138] sm:$0xff]  ;;  %s1195_s20 = smov [#allocation2]  }
  0x18   :  { %594 = vmatpush.bf16.msra.mxu2 %v1103_v23  ;;  %v1102_v27 = vld [vmem:[%s1458_s1 + $0x88] sm:$0xff]  ;;  %v1101_v31 = vld [vmem:[%s1458_s1 + $0x80] sm:$0xff]  ;;  %v1132_v34 = vld [vmem:[%s1458_s1 + $0x178] sm:$0xff]  ;;  %s798_s21 = sshll.u32 %s1195_s20, 4  ;;  %s799_s21 = int_to_ptr.vmem [resolvable:$true] %s798_s21 }
  0x19   :  { %607 = vmatpush.bf16.msra.mxu3 %v1111_v24  ;;  %v1110_v28 = vld [vmem:[%s1458_s1 + $0xc8] sm:$0xff]  ;;  %v1109_v32 = vld [vmem:[%s1458_s1 + $0xc0] sm:$0xff]  ;;  %v1140_v35 = vld [vmem:[%s1458_s1 + $0x1b8] sm:$0xff] }
  0x1a   :  { %569 = vmatpush.bf16.msra.mxu0 %v1086_v25  ;;  %v1148_v36 = vld [vmem:[%s1458_s1 + $0x1f8] sm:$0xff]  ;;  %v1123_v37 = vld [vmem:[%s1458_s1 + $0x130] sm:$0xff]  ;;  %v163_v39 = vld [vmem:[#allocation1] sm:$0xff] }
  0x1b   :  { %582 = vmatpush.bf16.msra.mxu1 %v1094_v26  ;;  %v165_v38 = vld [vmem:[#allocation1 + $0x12] sm:$0xff]  ;;  %v166_v41 = vld [vmem:[#allocation1 + $0x1b] sm:$0xff]  ;;  %v164_v42 = vld [vmem:[#allocation1 + $0x9] sm:$0xff] }
  0x1c   :  { %595 = vmatpush.bf16.msra.mxu2 %v1102_v27  ;;  %v1131_v40 = vld [vmem:[%s1458_s1 + $0x170] sm:$0xff]  ;;  %v1122_v45 = vld [vmem:[%s1458_s1 + $0x128] sm:$0xff]  ;;  %v1121_v49 = vld [vmem:[%s1458_s1 + $0x120] sm:$0xff] }
  0x1d   :  { %608 = vmatpush.bf16.msra.mxu3 %v1110_v28  ;;  %v1139_v43 = vld [vmem:[%s1458_s1 + $0x1b0] sm:$0xff]  ;;  %v1130_v46 = vld [vmem:[%s1458_s1 + $0x168] sm:$0xff]  ;;  %v1129_v50 = vld [vmem:[%s1458_s1 + $0x160] sm:$0xff] }
  0x1e   :  { %570 = vmatpush.bf16.msra.mxu0 %v1085_v29  ;;  %v1147_v44 = vld [vmem:[%s1458_s1 + $0x1f0] sm:$0xff]  ;;  %v1138_v47 = vld [vmem:[%s1458_s1 + $0x1a8] sm:$0xff]  ;;  %v1137_v51 = vld [vmem:[%s1458_s1 + $0x1a0] sm:$0xff] }
  0x1f   :  { %583 = vmatpush.bf16.msra.mxu1 %v1093_v30  ;;  %v1146_v48 = vld [vmem:[%s1458_s1 + $0x1e8] sm:$0xff]  ;;  %v1145_v52 = vld [vmem:[%s1458_s1 + $0x1e0] sm:$0xff]  ;;  %v1120_v53 = vld [vmem:[%s1458_s1 + $0x118] sm:$0xff] }
  0x20   :  { %596 = vmatpush.bf16.msra.mxu2 %v1101_v31  ;;  %v1128_v54 = vld [vmem:[%s1458_s1 + $0x158] sm:$0xff]  ;;  %v1119_v57 = vld [vmem:[%s1458_s1 + $0x110] sm:$0xff]  ;;  %v1118_v61 = vld [vmem:[%s1458_s1 + $0x108] sm:$0xff] }
  0x21   :  { %609 = vmatpush.bf16.msra.mxu3 %v1109_v32  ;;  %571 = vmatmul.bf16.vlgmr.msra.gmra.mxu0 %v163_v39  ;;  %v1136_v55 = vld [vmem:[%s1458_s1 + $0x198] sm:$0xff]  ;;  %v1127_v58 = vld [vmem:[%s1458_s1 + $0x150] sm:$0xff]  ;;  %v1126_v62 = vld [vmem:[%s1458_s1 + $0x148] sm:$0xff] }
  0x22   :  { %615 = vmatpush.bf16.msrb.mxu0 %v1124_v33  ;;  %584 = vmatmul.bf16.vlgmr.msra.gmra.mxu1 %v164_v42  ;;  %v1144_v56 = vld [vmem:[%s1458_s1 + $0x1d8] sm:$0xff]  ;;  %v1135_v59 = vld [vmem:[%s1458_s1 + $0x190] sm:$0xff]  ;;  %v1134_v63 = vld [vmem:[%s1458_s1 + $0x188] sm:$0xff] }
  0x23   :  { %628 = vmatpush.bf16.msrb.mxu1 %v1132_v34  ;;  %597 = vmatmul.bf16.vlgmr.msra.gmra.mxu2 %v165_v38  ;;  %v1143_v60 = vld [vmem:[%s1458_s1 + $0x1d0] sm:$0xff]  ;;  %v1142_v0 = vld [vmem:[%s1458_s1 + $0x1c8] sm:$0xff]  ;;  %v1117_v1 = vld [vmem:[%s1458_s1 + $0x100] sm:$0xff] }
  0x24   :  { %641 = vmatpush.bf16.msrb.mxu2 %v1140_v35  ;;  %610 = vmatmul.bf16.vlgmr.msra.gmra.mxu3 %v166_v41  ;;  %v1125_v2 = vld [vmem:[%s1458_s1 + $0x140] sm:$0xff]  ;;  %v168_v6 = vld [vmem:[#allocation1 + $0x2d] sm:$0xff]  ;;  %v169_v7 = vld [vmem:[#allocation1 + $0x36] sm:$0xff] }
  0x25   :  { %654 = vmatpush.bf16.msrb.mxu3 %v1148_v36  ;;  %v1133_v3 = vld [vmem:[%s1458_s1 + $0x180] sm:$0xff]  ;;  %v1150_v24 = vld [vmem:[%s1460_s3 + $0x8] sm:$0xff] }
  0x26   :  { %616 = vmatpush.bf16.msrb.mxu0 %v1123_v37  ;;  %v1141_v4 = vld [vmem:[%s1458_s1 + $0x1c0] sm:$0xff] }
  0x27   :  { %629 = vmatpush.bf16.msrb.mxu1 %v1131_v40  ;;  %v167_v5 = vld [vmem:[#allocation1 + $0x24] sm:$0xff]  ;;  %v1154_v15 = vld [vmem:[%s1459_s2] ss:$0 sm:$0xff] }
  0x28   :  { %642 = vmatpush.bf16.msrb.mxu2 %v1139_v43  ;;  %v170_v8 = vld [vmem:[#allocation1 + $0x3f] sm:$0xff] }
  0x29   :  { %655 = vmatpush.bf16.msrb.mxu3 %v1147_v44  ;;  %v1149_v26 = vld [vmem:[%s1460_s3] sm:$0xff] }
  0x2a   :  { %617 = vmatpush.bf16.msrb.mxu0 %v1122_v45 }
  0x2b   :  { %630 = vmatpush.bf16.msrb.mxu1 %v1130_v46 }
  0x2c   :  { %643 = vmatpush.bf16.msrb.mxu2 %v1138_v47 }
  0x2d   :  { %656 = vmatpush.bf16.msrb.mxu3 %v1146_v48 }
  0x2e   :  { %618 = vmatpush.bf16.msrb.mxu0 %v1121_v49 }
  0x2f   :  { %631 = vmatpush.bf16.msrb.mxu1 %v1129_v50  ;;  %v1152_v50 = vld [vmem:[%s1462_s5 + $0x8] sm:$0xff] }
  0x30   :  { %644 = vmatpush.bf16.msrb.mxu2 %v1137_v51  ;;  %v1151_v51 = vld [vmem:[%s1462_s5] sm:$0xff] }
  0x31   :  { %657 = vmatpush.bf16.msrb.mxu3 %v1145_v52  ;;  %v1155_v52 = vld [vmem:[%s1461_s4] ss:$0 sm:$0xff] }
  0x32   :  { %619 = vmatpush.bf16.msrb.mxu0 %v1120_v53 }
  0x33   :  { %632 = vmatpush.bf16.msrb.mxu1 %v1128_v54 }
  0x34   :  { %645 = vmatpush.bf16.msrb.mxu2 %v1136_v55 }
  0x35   :  { %658 = vmatpush.bf16.msrb.mxu3 %v1144_v56 }
  0x36   :  { %620 = vmatpush.bf16.msrb.mxu0 %v1119_v57 }
  0x37   :  { %633 = vmatpush.bf16.msrb.mxu1 %v1127_v58 }
  0x38   :  { %646 = vmatpush.bf16.msrb.mxu2 %v1135_v59 }
  0x39   :  { %659 = vmatpush.bf16.msrb.mxu3 %v1143_v60 }
  0x3a   :  { %621 = vmatpush.bf16.msrb.mxu0 %v1118_v61 }
  0x3b   :  { %634 = vmatpush.bf16.msrb.mxu1 %v1126_v62 }
  0x3c   :  { %647 = vmatpush.bf16.msrb.mxu2 %v1134_v63 }
  0x3d   :  { %660 = vmatpush.bf16.msrb.mxu3 %v1142_v0 }
  0x3e   :  { %622 = vmatpush.bf16.msrb.mxu0 %v1117_v1 }
  0x3f   :  { %635 = vmatpush.bf16.msrb.mxu1 %v1125_v2 }
  0x40   :  { %648 = vmatpush.bf16.msrb.mxu2 %v1133_v3 }
  0x41   :  { %661 = vmatpush.bf16.msrb.mxu3 %v1141_v4  ;;  %623 = vmatmul.bf16.vlgmr.msrb.gmra.mxu0 %v167_v5 }
  0x42   :  { %636 = vmatmul.bf16.vlgmr.msrb.gmra.mxu1 %v168_v6  ;;  %717 = vmatpush.bf16.msra.mxu0 %v1150_v24  ;;  %v1156_v6 = vld [vmem:[%s1463_s6] ss:$0 sm:$0xff]  ;;  %s800_s6 = sshll.u32 %s1464_s7, 4  ;;  %s801_s6 = int_to_ptr.hbm [resolvable:$true] %s800_s6 }
  0x43   :  { %649 = vmatmul.bf16.vlgmr.msrb.gmra.mxu2 %v169_v7  ;;  %773 = vmatpush.bf16.msra.mxu1 %v1152_v50 }
  0x44   :  { %662 = vmatmul.bf16.vlgmr.msrb.gmra.mxu3 %v170_v8 }
  0x46   :  { %718 = vmatpush.bf16.msra.mxu0 %v1149_v26 }
  0x47   :  { %774 = vmatpush.bf16.msra.mxu1 %v1151_v51 }
  0x9e   :  { %v572_v9 = vpop.f32.mrf.mxu0 }
  0x9f   :  { %v585_v10 = vpop.f32.mrf.mxu1  ;;  %v573_v18 = vadd.f32 %v1154_v15, %v572_v9 }
  0xa1   :  { %v586_v19 = vadd.f32 %v585_v10, %v573_v18 }
  0xa6   :  { %v598_v11 = vpop.f32.mrf.mxu2  ;;  %v574_v13 = vpop.f32.mrf.mxu0 }
  0xa7   :  { %v611_v12 = vpop.f32.mrf.mxu3  ;;  %v587_v14 = vpop.f32.mrf.mxu1  ;;  %v599_v20 = vadd.f32 %v598_v11, %v586_v19 }
  0xa9   :  { %v612_v21 = vadd.f32 %v611_v12, %v599_v20 }
  0xae   :  { %v600_v16 = vpop.f32.mrf.mxu2 }
  0xaf   :  { %v613_v17 = vpop.f32.mrf.mxu3 }
  0xbe   :  { %v624_v22 = vpop.f32.mrf.mxu0 }
  0xbf   :  { %v637_v23 = vpop.f32.mrf.mxu1  ;;  %v625_v25 = vadd.f32 %v624_v22, %v612_v21 }
  0xc1   :  { %v638_v27 = vadd.f32 %v637_v23, %v625_v25 }
  0xc6   :  { %v650_v28 = vpop.f32.mrf.mxu2  ;;  %v626_v31 = vpop.f32.mrf.mxu0 }
  0xc7   :  { %v663_v29 = vpop.f32.mrf.mxu3  ;;  %v651_v30 = vadd.f32 %v650_v28, %v638_v27  ;;  %v639_v32 = vpop.f32.mrf.mxu1 }
  0xc9   :  { %v664_v33 = vadd.f32 %v663_v29, %v651_v30 }
  0xcb   :  { %v1065_v34 = vmul.f32 -1.442695, %v664_v33 }
  0xcd   :  { %1157 = vpow2.f32 %v1065_v34 }
  0xce   :  { %v652_v35 = vpop.f32.mrf.mxu2 }
  0xcf   :  { %v665_v36 = vpop.f32.mrf.mxu3 }
  0xd3   :  { %v1158_v37 = vpop.eup %1157 }
  0xd4   :  { %v670_v38 = vadd.f32 1.0, %v1158_v37 }
  0xd6   :  { %1159 = vrcp.f32 %v670_v38  ;;  %v682_v42 = vand.u32 2147483648, %v670_v38  ;;  %v680_v44 = vand.u32 2147483647, %v670_v38  ;;  %vm676_vm1 = vweird.f32 %v670_v38 }
  0xd8   :  { %v683_v46 = vor.u32 1.1754944e-38, %v682_v42  ;;  %vm681_vm3 = vcmp.eq.f32.partialorder %v680_v44, 8.507059e+37 }
  0xdc   :  { %v1160_v39 = vpop.eup %1159 }
  0xdd   :  { %v672_v40 = vmul.f32 %v1160_v39, %v670_v38  ;;  %vm677_vm0 = vweird.f32 %v1160_v39 }
  0xde   :  { %vm678_vm2 = vmor %vm676_vm1, %vm677_vm0 }
  0xdf   :  { %v673_v41 = vsub.f32 1.0, %v672_v40 }
  0xe1   :  { %v674_v43 = vmul.f32 %v1160_v39, %v673_v41 }
  0xe3   :  { %v675_v45 = vadd.f32 %v1160_v39, %v674_v43 }
  0xe5   :  { %v679_v47 = vsel %vm678_vm2, %v1160_v39, %v675_v45 }
  0xe6   :  { %v684_v48 = vsel %vm681_vm3, %v683_v46, %v679_v47 }
  0xe7   :  { %v686_v49 = vpack.c.bf16 %v684_v48, %v684_v48 }
  0xe9   :  { %1074 = vmatmul.msk.bf16.vlgmr.msra.gmra.mxu0 %vm707_vm4, %v686_v49 }
 0x166   :  { %v720_v53 = vpop.f32.mrf.mxu0 }
 0x167   :  { %v721_v54 = vadd.f32 %v1155_v52, %v720_v53 }
 0x169   :  { %v1075_v55 = vmul.f32 -1.442695, %v721_v54 }
 0x16b   :  { %1161 = vpow2.f32 %v1075_v55 }
 0x16e   :  { %v722_v56 = vpop.f32.mrf.mxu0 }
 0x171   :  { %v1162_v57 = vpop.eup %1161 }
 0x172   :  { %v727_v58 = vadd.f32 1.0, %v1162_v57 }
 0x174   :  { %1163 = vrcp.f32 %v727_v58  ;;  %v739_v62 = vand.u32 2147483648, %v727_v58  ;;  %v737_v0 = vand.u32 2147483647, %v727_v58  ;;  %vm733_vm6 = vweird.f32 %v727_v58 }
 0x176   :  { %v740_v2 = vor.u32 1.1754944e-38, %v739_v62  ;;  %vm738_vm8 = vcmp.eq.f32.partialorder %v737_v0, 8.507059e+37 }
 0x17a   :  { %v1164_v59 = vpop.eup %1163 }
 0x17b   :  { %v729_v60 = vmul.f32 %v1164_v59, %v727_v58  ;;  %vm734_vm5 = vweird.f32 %v1164_v59 }
 0x17c   :  { %vm735_vm7 = vmor %vm733_vm6, %vm734_vm5 }
 0x17d   :  { %v730_v61 = vsub.f32 1.0, %v729_v60 }
 0x17f   :  { %v731_v63 = vmul.f32 %v1164_v59, %v730_v61 }
 0x181   :  { %v732_v1 = vadd.f32 %v1164_v59, %v731_v63 }
 0x183   :  { %v736_v3 = vsel %vm735_vm7, %v1164_v59, %v732_v1 }
 0x184   :  { %v741_v4 = vsel %vm738_vm8, %v740_v2, %v736_v3 }
 0x185   :  { %v743_v5 = vpack.c.bf16 %v741_v4, %v741_v4 }
 0x187   :  { %1084 = vmatmul.msk.bf16.vlgmr.msra.gmra.mxu1 %vm707_vm4, %v743_v5 }
 0x204   :  { %v776_v7 = vpop.f32.mrf.mxu1 }
 0x205   :  { %v777_v8 = vadd.f32 %v1156_v6, %v776_v7 }
 0x207   :  { %v781_v9 = vsel %vm780_vm9, %v777_v8, -inf }
 0x208   :  { %782 = vmax.xlane.f32.xlu0 %v781_v9 }
 0x20c   :  { %v778_v10 = vpop.f32.mrf.mxu1 }
 0x27b   :  { %v783_v11 = vpop.xlane.xlu0 %782 }
 0x27c   :  { %v784_v12 = vsub.f32 %v777_v8, %v783_v11 }
 0x27e   :  { %v785_v13 = vmul.f32 1.442695, %v784_v12 }
 0x280   :  { %1165 = vpow2.f32 %v785_v13 }
 0x286   :  { %v1166_v14 = vpop.eup %1165 }
 0x287   :  { %v787_v15 = vsel %vm780_vm9, %v1166_v14, 0.0 }
 0x288   :  { %788 = vadd.xlane.f32.xlu0 %v787_v15 }
 0x2fb   :  { %v789_v16 = vpop.xlane.xlu0 %788 }
 0x2fc   :  { %1167 = vrcp.f32 %v789_v16 }
 0x302   :  { %v1168_v17 = vpop.eup %1167 }
 0x303   :  { %v791_v18 = vmul.f32 %v1168_v17, %v1166_v14 }
 0x305   :  { %792 = vst [vmem:[#allocation2] sm:$0x3] %v791_v18 }
 0x306   :  { %803 = dma.vmem_to_hbm [thread:$0]  %s799_s21, 32, %s801_s6, [#allocation3]  }
 0x307   :  { %1193 = dma.done.wait [#allocation3], 32  }
 0x308   :  { %1194 = vsyncadd [#allocation3], 4294967264 }
 0x309   :  { %808 = vsyncpa [#allocation3], 1 }

</bundles_post_ra>
